<compile_context>
chip_gen: v7x
topology: tpu7x:2x2x1
jax: 0.10.0
libtpu: 0.0.40
codegen_flags: <defaults>
</compile_context>

<pallas_src>
import functools

import jax
import jax.numpy as jnp
from jax.experimental import pallas as pl
from jax.experimental.pallas import tpu as pltpu


def mixture_kernel(chosen_ref, x_ref, w_ref, b_ref, out_ref, acc_ref, *,
                   num_models, num_classes):
    """Grid = (batch blocks [parallel], K blocks [arbitrary]).

    chosen_ref : [TB, 1]          int32  chosen classifier id per sample
    x_ref      : [TB, TK]         bf16   flattened batch block (K tile)
    w_ref      : [TK, NTOT_PAD]   bf16   densely packed weights of all classifiers
    b_ref      : [1,  NTOT_PAD]   f32    densely packed biases of all classifiers
    out_ref    : [TB, NC_PAD]     f32    selected logits (lane-dense, padded)
    acc_ref    : [TB, NTOT_PAD]   f32    VMEM accumulator over the K axis
    """
    k = pl.program_id(1)

    @pl.when(k == 0)
    def _init():
        acc_ref[...] = jnp.zeros_like(acc_ref)

    # One MXU pass per K tile: partial logits of every classifier at once.
    acc_ref[...] += jnp.dot(x_ref[...], w_ref[...],
                            preferred_element_type=jnp.float32)

    @pl.when(k == pl.num_programs(1) - 1)
    def _finalize():
        ntot_pad = acc_ref.shape[-1]
        nc_pad = out_ref.shape[-1]

        logits = acc_ref[...] + b_ref[...]          # [TB, NTOT_PAD] f32
        chosen = chosen_ref[...]                    # [TB, 1] int32

        # Per-row select of the chosen classifier's NC lanes.  Group g lives at
        # lanes [g*NC, (g+1)*NC); a static left-rotation of g*NC lanes (XLU)
        # aligns it to lanes [0, NC), then a [TB,1] predicate picks the rows.
        sel = jnp.where(chosen == 0, logits, 0.0)
        for g in range(1, num_models):
            rolled = pltpu.roll(logits, shift=ntot_pad - g * num_classes, axis=1)
            sel = sel + jnp.where(chosen == g, rolled, 0.0)

        sel = sel[:, :nc_pad]                       # 128-aligned static slice
        lane = jax.lax.broadcasted_iota(jnp.int32, sel.shape, 1)
        out_ref[...] = jnp.where(lane < num_classes, sel, 0.0)


def pack_mixture_params(weight_stack, bias_stack, num_classes):
    """One-time packing of all classifier heads into a dense fused slab.

    weight_stack: [M, D, NC] f32   bias_stack: [M, 1, NC] f32
    Returns (w_fused [K_PAD, NTOT_PAD] bf16, b_fused [1, NTOT_PAD] f32).
    Done OUTSIDE the forward hot path (review feedback): no per-call transpose /
    HBM re-materialization of the slab.
    """
    M, D, NC = weight_stack.shape[0], weight_stack.shape[1], num_classes
    ntot = M * NC
    ntot_pad = 128 * pl.cdiv(ntot, 128)
    k_pad = 128 * pl.cdiv(D, 128)

    w = jnp.pad(weight_stack, ((0, 0), (0, k_pad - D), (0, 0)))     # [M, K_PAD, NC]
    w_fused = jnp.transpose(w, (1, 0, 2)).reshape(k_pad, ntot)      # col = g*NC + c
    w_fused = jnp.pad(w_fused, ((0, 0), (0, ntot_pad - ntot)))
    w_fused = w_fused.astype(jnp.bfloat16)

    b_fused = bias_stack.astype(jnp.float32).reshape(1, ntot)
    b_fused = jnp.pad(b_fused, ((0, 0), (0, ntot_pad - ntot)))
    return w_fused, b_fused


def mixture_forward(x, w_fused, b_fused, chosen_ids, *, num_classes, num_models):
    """x: [B,C,H,W]; w_fused: [K_PAD, NTOT_PAD] bf16; b_fused: [1, NTOT_PAD] f32;
    chosen_ids: [B] int (classifier id drawn per sample, as in forward())."""
    B = x.shape[0]
    D = x.shape[1] * x.shape[2] * x.shape[3]
    k_pad, ntot_pad = w_fused.shape
    nc_pad = 128 * pl.cdiv(num_classes, 128)        # lane-dense output width

    x_flat = x.reshape(B, D).astype(jnp.bfloat16)   # matches x.view(B, -1)
    if k_pad != D:
        x_flat = jnp.pad(x_flat, ((0, 0), (0, k_pad - D)))
    chosen_col = chosen_ids.astype(jnp.int32).reshape(B, 1)

    # K tiling (scales to WideResNet-size D; trivially 2 steps here).
    tk = 512 if k_pad % 512 == 0 else k_pad
    # Batch block: whole batch here; at real batch sizes tile to >=256 rows and
    # keep it 'parallel' so v7x's second TensorCore gets work.
    tb = B

    kernel = functools.partial(mixture_kernel,
                               num_models=num_models, num_classes=num_classes)

    out_pad = pl.pallas_call(
        kernel,
        out_shape=jax.ShapeDtypeStruct((B, nc_pad), jnp.float32),
        grid=(B // tb, k_pad // tk),
        in_specs=[
            pl.BlockSpec((tb, 1), lambda b, k: (b, 0)),          # chosen ids
            pl.BlockSpec((tb, tk), lambda b, k: (b, k)),         # x (K tile)
            pl.BlockSpec((tk, ntot_pad), lambda b, k: (k, 0)),   # fused W (K tile)
            pl.BlockSpec((1, ntot_pad), lambda b, k: (0, 0)),    # fused bias
        ],
        out_specs=pl.BlockSpec((tb, nc_pad), lambda b, k: (b, 0)),
        scratch_shapes=[pltpu.VMEM((tb, ntot_pad), jnp.float32)],
        compiler_params=pltpu.CompilerParams(
            dimension_semantics=("parallel", "arbitrary"),
            # Explicit, conservative scoped-VMEM budget (fits v5e/v6e/v7x).
            vmem_limit_bytes=32 * 1024 * 1024,
        ),
    )(chosen_col, x_flat, w_fused, b_fused)

    return out_pad[:, :num_classes]


if __name__ == "__main__":
    # Small shapes consistent with the module (CIFAR-like NCHW input, 10 classes).
    B, C, H, W = 8, 4, 16, 16
    NC = 10          # config['number_of_class']
    M = 3            # config['number_of_models']
    ALPHA = 0.1      # config['alpha']
    D = C * H * W

    key = jax.random.PRNGKey(0)
    k_x, k_w, k_b, k_choice = jax.random.split(key, 4)

    x = jax.random.normal(k_x, (B, C, H, W), dtype=jnp.float32)

    # Deterministic synthetic classifier parameters (stand-ins for the WideResNets).
    weight_stack = jax.random.normal(k_w, (M, D, NC), dtype=jnp.float32) * 0.02
    bias_stack = jax.random.normal(k_b, (M, 1, NC), dtype=jnp.float32) * 0.1

    # Mixture weights exactly as updateWeights(alpha) constructs them.
    mix_w = [1.0]
    for _ in range(1, M):
        mix_w = [w * (1.0 - ALPHA) for w in mix_w] + [ALPHA]
    mix_w = jnp.asarray(mix_w, dtype=jnp.float32)
    p = mix_w / jnp.sum(mix_w)

    # Per-sample classifier draw (np.random.choice in torch -> jax.random.choice here).
    chosen_ids = jax.random.choice(k_choice, M, shape=(B,), p=p)

    # Pack the fused slab ONCE (outside the forward path).
    w_fused, b_fused = pack_mixture_params(weight_stack, bias_stack, NC)
    w_fused, b_fused = jax.block_until_ready((w_fused, b_fused))

    fwd = jax.jit(functools.partial(mixture_forward, num_classes=NC, num_models=M))
    out = fwd(x, w_fused, b_fused, chosen_ids)
    out = jax.block_until_ready(out)

    # Plain-JAX reference of the same forward semantics, using the same bf16
    # operands / f32 accumulation the kernel uses.
    x_bf = x.reshape(B, D).astype(jnp.bfloat16)
    w_bf = weight_stack.astype(jnp.bfloat16)
    all_logits = jnp.einsum("bd,mdc->mbc", x_bf, w_bf,
                            preferred_element_type=jnp.float32) + bias_stack
    ref = all_logits[chosen_ids, jnp.arange(B), :]

    assert out.shape == (B, NC)
    assert jnp.allclose(out, ref, atol=1e-2, rtol=1e-2)

    print("KERNEL_OK")
</pallas_src>

<mosaic_0001>
module attributes {stable_mosaic.version = 11 : i64} {
  func.func @mixture_kernel(%arg0: i32, %arg1: i32, %arg2: memref<8x1xi32, #tpu.memory_space<vmem>>, %arg3: memref<8x512xbf16, #tpu.memory_space<vmem>>, %arg4: memref<512x128xbf16, #tpu.memory_space<vmem>>, %arg5: memref<1x128xf32, #tpu.memory_space<vmem>>, %arg6: memref<8x128xf32, #tpu.memory_space<vmem>>, %arg7: memref<8x128xf32, #tpu.memory_space<vmem>>) attributes {dimension_semantics = [#tpu.dimension_semantics<parallel>, #tpu.dimension_semantics<arbitrary>], iteration_bounds = array<i64: 1, 2>, scalar_prefetch = 0 : i64, scratch_operands = 1 : i64, tpu.core_type = #tpu.core_type<tc>, window_params = [{transform_indices = @transform_0, window_bounds = array<i64: 8, 1>}, {transform_indices = @transform_1, window_bounds = array<i64: 8, 512>}, {transform_indices = @transform_2, window_bounds = array<i64: 512, 128>}, {pipeline_mode = #tpu.pipeline_mode<synchronous>, transform_indices = @transform_3, window_bounds = array<i64: 1, 128>}, {transform_indices = @transform_4, window_bounds = array<i64: 8, 128>}]} {
    %c0_i32 = arith.constant 0 : i32
    %0 = arith.cmpi eq, %arg1, %c0_i32 : i32
    %1 = arith.extui %0 : i1 to i32
    %c0_i32_0 = arith.constant 0 : i32
    %2 = arith.cmpi ne, %1, %c0_i32_0 : i32
    scf.if %2 {
      %cst_9 = arith.constant 0.000000e+00 : f32
      %12 = vector.broadcast %cst_9 : f32 to vector<8x128xf32>
      %c0_10 = arith.constant 0 : index
      %c0_11 = arith.constant 0 : index
      %13 = vector.load %arg7[%c0_10, %c0_11] : memref<8x128xf32, #tpu.memory_space<vmem>>, vector<8x128xf32>
      tpu.vector_store %arg7[%c0_10, %c0_11], %12 {strides = array<i32>} : memref<8x128xf32, #tpu.memory_space<vmem>>, vector<8x128xf32>,
    } else {
    }
    %c0 = arith.constant 0 : index
    %c0_1 = arith.constant 0 : index
    %3 = vector.load %arg7[%c0, %c0_1] : memref<8x128xf32, #tpu.memory_space<vmem>>, vector<8x128xf32>
    %c0_2 = arith.constant 0 : index
    %c0_3 = arith.constant 0 : index
    %4 = vector.load %arg3[%c0_2, %c0_3] : memref<8x512xbf16, #tpu.memory_space<vmem>>, vector<8x512xbf16>
    %c0_4 = arith.constant 0 : index
    %c0_5 = arith.constant 0 : index
    %5 = vector.load %arg4[%c0_4, %c0_5] : memref<512x128xbf16, #tpu.memory_space<vmem>>, vector<512x128xbf16>
    %cst = arith.constant dense<0.000000e+00> : vector<8x128xf32>
    %6 = tpu.matmul %4, %5, %cst {dimension_numbers = #tpu.dot_dimension_numbers<[1], [0], [0], [1], [0, 0, 1, 1], [], []>} : vector<8x512xbf16>, vector<512x128xbf16>, vector<8x128xf32> -> vector<8x128xf32>
    %7 = arith.addf %3, %6 : vector<8x128xf32>
    %c0_6 = arith.constant 0 : index
    %c0_7 = arith.constant 0 : index
    %8 = vector.load %arg7[%c0_6, %c0_7] : memref<8x128xf32, #tpu.memory_space<vmem>>, vector<8x128xf32>
    tpu.vector_store %arg7[%c0_6, %c0_7], %7 {strides = array<i32>} : memref<8x128xf32, #tpu.memory_space<vmem>>, vector<8x128xf32>,
    %c1_i32 = arith.constant 1 : i32
    %9 = arith.cmpi eq, %arg1, %c1_i32 : i32
    %10 = arith.extui %9 : i1 to i32
    %c0_i32_8 = arith.constant 0 : i32
    %11 = arith.cmpi ne, %10, %c0_i32_8 : i32
    scf.if %11 {
      %c0_9 = arith.constant 0 : index
      %c0_10 = arith.constant 0 : index
      %12 = vector.load %arg7[%c0_9, %c0_10] : memref<8x128xf32, #tpu.memory_space<vmem>>, vector<8x128xf32>
      %c0_11 = arith.constant 0 : index
      %c0_12 = arith.constant 0 : index
      %13 = vector.load %arg5[%c0_11, %c0_12] : memref<1x128xf32, #tpu.memory_space<vmem>>, vector<1x128xf32>
      %14 = vector.broadcast %13 : vector<1x128xf32> to vector<8x128xf32>
      %15 = arith.addf %12, %14 : vector<8x128xf32>
      %c0_13 = arith.constant 0 : index
      %c0_14 = arith.constant 0 : index
      %16 = vector.load %arg2[%c0_13, %c0_14] : memref<8x1xi32, #tpu.memory_space<vmem>>, vector<8x1xi32>
      %c0_i32_15 = arith.constant 0 : i32
      %17 = vector.broadcast %c0_i32_15 : i32 to vector<8x1xi32>
      %18 = arith.cmpi eq, %16, %17 : vector<8x1xi32>
      %cst_16 = arith.constant 0.000000e+00 : f32
      %19 = vector.shape_cast %18 : vector<8x1xi1> to vector<8x1xi1>
      %20 = vector.broadcast %19 : vector<8x1xi1> to vector<8x128xi1>
      %21 = vector.broadcast %cst_16 : f32 to vector<8x128xf32>
      %22 = arith.select %20, %15, %21 : vector<8x128xi1>, vector<8x128xf32>
      %c118_i32 = arith.constant 118 : i32
      %23 = tpu.dynamic_rotate %15 by %c118_i32 dim 1 : vector<8x128xf32>, i32 -> vector<8x128xf32>
      %c1_i32_17 = arith.constant 1 : i32
      %24 = vector.broadcast %c1_i32_17 : i32 to vector<8x1xi32>
      %25 = arith.cmpi eq, %16, %24 : vector<8x1xi32>
      %cst_18 = arith.constant 0.000000e+00 : f32
      %26 = vector.shape_cast %25 : vector<8x1xi1> to vector<8x1xi1>
      %27 = vector.broadcast %26 : vector<8x1xi1> to vector<8x128xi1>
      %28 = vector.broadcast %cst_18 : f32 to vector<8x128xf32>
      %29 = arith.select %27, %23, %28 : vector<8x128xi1>, vector<8x128xf32>
      %30 = arith.addf %22, %29 : vector<8x128xf32>
      %c108_i32 = arith.constant 108 : i32
      %31 = tpu.dynamic_rotate %15 by %c108_i32 dim 1 : vector<8x128xf32>, i32 -> vector<8x128xf32>
      %c2_i32 = arith.constant 2 : i32
      %32 = vector.broadcast %c2_i32 : i32 to vector<8x1xi32>
      %33 = arith.cmpi eq, %16, %32 : vector<8x1xi32>
      %cst_19 = arith.constant 0.000000e+00 : f32
      %34 = vector.shape_cast %33 : vector<8x1xi1> to vector<8x1xi1>
      %35 = vector.broadcast %34 : vector<8x1xi1> to vector<8x128xi1>
      %36 = vector.broadcast %cst_19 : f32 to vector<8x128xf32>
      %37 = arith.select %35, %31, %36 : vector<8x128xi1>, vector<8x128xf32>
      %38 = arith.addf %30, %37 : vector<8x128xf32>
      %39 = tpu.iota {dimensions = array<i32: 1>} : vector<8x128xi32>
      %c10_i32 = arith.constant 10 : i32
      %40 = vector.broadcast %c10_i32 : i32 to vector<8x128xi32>
      %41 = arith.cmpi slt, %39, %40 : vector<8x128xi32>
      %cst_20 = arith.constant 0.000000e+00 : f32
      %42 = vector.broadcast %cst_20 : f32 to vector<8x128xf32>
      %43 = arith.select %41, %38, %42 : vector<8x128xi1>, vector<8x128xf32>
      %c0_21 = arith.constant 0 : index
      %c0_22 = arith.constant 0 : index
      %44 = vector.load %arg6[%c0_21, %c0_22] : memref<8x128xf32, #tpu.memory_space<vmem>>, vector<8x128xf32>
      tpu.vector_store %arg6[%c0_21, %c0_22], %43 {strides = array<i32>} : memref<8x128xf32, #tpu.memory_space<vmem>>, vector<8x128xf32>,
    } else {
    }
    return
  }
  func.func @transform_0(%arg0: i32, %arg1: i32) -> (i32, i32) {
    %c0_i32 = arith.constant 0 : i32
    %c0_i32_0 = arith.constant 0 : i32
    return %arg0, %c0_i32 : i32, i32
  }
  func.func @transform_1(%arg0: i32, %arg1: i32) -> (i32, i32) {
    %c0_i32 = arith.constant 0 : i32
    return %arg0, %arg1 : i32, i32
  }
  func.func @transform_2(%arg0: i32, %arg1: i32) -> (i32, i32) {
    %c0_i32 = arith.constant 0 : i32
    %c0_i32_0 = arith.constant 0 : i32
    return %arg1, %c0_i32 : i32, i32
  }
  func.func @transform_3(%arg0: i32, %arg1: i32) -> (i32, i32) {
    %c0_i32 = arith.constant 0 : i32
    %c0_i32_0 = arith.constant 0 : i32
    %c0_i32_1 = arith.constant 0 : i32
    return %c0_i32, %c0_i32_0 : i32, i32
  }
  func.func @transform_4(%arg0: i32, %arg1: i32) -> (i32, i32) {
    %c0_i32 = arith.constant 0 : i32
    %c0_i32_0 = arith.constant 0 : i32
    return %arg0, %c0_i32 : i32, i32
  }
}

</mosaic_0001>

<bundles_post_ra>
// kernel: mixture_forward.1
= control target key start
LH: loop header
LB: loop body
LE: loop exit
PB: predicated region body
PF: predicated region fallthrough
CT: control target
= control target key end

     0   :  { %9 = vsyncpa [#allocation4], 0  ;;  %s1008_s15 = smov 0   ;;  %s1010_s16 = smov 0   ;;  %s1120_s0 = inlined_call_operand.vmem [shape: s32[8,1], index: 0, kind: input, shape index: {}]   ;;  %s1121_s1 = inlined_call_operand.vmem [shape: bf16[8,1024], index: 1, kind: input, shape index: {}]   ;;  %s1122_s2 = inlined_call_operand.vmem [shape: bf16[1024,128], index: 2, kind: input, shape index: {}]   ;;  %s1123_s3 = inlined_call_operand.vmem [shape: f32[1,128], index: 3, kind: input, shape index: {}]   ;;  %s1124_s4 = inlined_call_operand.hbm [shape: f32[8,128], index: 4, kind: output, shape index: {}]  }
   0x1   :  { %s1012_s17 = smov 0  }
   0x2 LB: > { %s755_s18 = sadd.s32 4294967295, %s976_s17   ;;  %s24_s19 = sadd.s32 1, %s972_s16  ;;  %s976_s17 = sphi %s1012_s17, %s15_s17   ;;  %s972_s16 = sphi %s1010_s16, %s1127_s16   ;;  %s968_s15 = sphi %s1008_s15, %s1126_s15  }
   0x3   : > { %p25_p0 = scmp.ge.s32.totalorder %s24_s19, 2  ;;  %p759_p1 = scmp.ge.s32.totalorder %s976_s17, 1 }
   0x4   : > { %p202_p2 = scmp.lt.s32.totalorder %s976_s17, 3 }
   0x5   : > { %s1129_s19 = smov (%p25_p0, %s24_s19), 0 }
   0x6   : > { %p203_p3 = pnand %p759_p1, %p202_p2 }
   0x7   : > { %s760_s20 = sshll.u32 (!%p203_p3), %s968_s15, 2  ;;  %s762_s21 = sshll.u32 (!%p203_p3), %s968_s15, 6 }
   0x8   : > { %206 = sbr.rel (%p203_p3) target bundleno = 436 (0x1b4), region = 36  ;;  %p243_p4 = scmp.lt.s32.totalorder (!%p203_p3), %s760_s20, 7 }
   0x9   : > { %p251_p5 = scmp.lt.s32.totalorder (!%p203_p3), %s762_s21, 127  ;;  %p764_p6 = scmp.ne.s32.totalorder (!%p203_p3), %s968_s15, 0 }
   0xf   : > { %s1131_s20 = smov (!%p243_p4, %s760_s20), 7  ;;  %s1133_s21 = smov (!%p251_p5, %s762_s21), 127 }
  0x10   : > { %s761_s22 = sshll.u32 %s1131_s20, 2  ;;  %s763_s26 = sshll.u32 %s1133_s21, 2  ;;  %v978_v0 = vmov (!%p764_p6), 0.0  }
  0x11   : > { %s1034_s25 = scalar_lea.vmem %s1121_s1, %s761_s22  ;;  %s1039_s29 = scalar_lea.vmem %s1122_s2, %s763_s26  ;;  %261 = vst [vmem:[#allocation2] sm:$0xff] (!%p764_p6), %v978_v0 }
  0x12   : > { %260 = sbr.rel (%p764_p6) target bundleno = 25 (0x19), region = 40 }
  0x19 PF: > { %v886_v1 = vld [vmem:[%s1039_s29 + $0x40] sm:$0xff]   ;;  %v890_v5 = vld [vmem:[%s1039_s29 + $0x48] sm:$0xff]   ;;  %v894_v9 = vld [vmem:[%s1039_s29 + $0x50] sm:$0xff]   ;;  %p801_p7 = scmp.ne.s32.totalorder %s968_s15, 1 }
  0x1a   : > { %v887_v2 = vld [vmem:[%s1039_s29 + $0xc0] sm:$0xff]   ;;  %807 = vmatprep.subr.bf16.mxu0 %v886_v1  ;;  %v891_v6 = vld [vmem:[%s1039_s29 + $0xc8] sm:$0xff]   ;;  %v895_v10 = vld [vmem:[%s1039_s29 + $0xd0] sm:$0xff]   ;;  %v979_v55 = vmov (!%p801_p7), 0   ;;  %s980_s8 = smov (!%p801_p7), 118   ;;  %s981_s9 = smov (!%p801_p7), 108   ;;  %v658_v62 = vlaneseq (!%p801_p7) }
  0x1b   : > { %v888_v3 = vld [vmem:[%s1039_s29] sm:$0xff]   ;;  %829 = vmatprep.subr.bf16.mxu1 %v887_v2  ;;  %v892_v7 = vld [vmem:[%s1039_s29 + $0x8] sm:$0xff]   ;;  %v896_v11 = vld [vmem:[%s1039_s29 + $0x10] sm:$0xff]   ;;  %922 = vset.pattern.permute.xlu0 (!%p801_p7), %v979_v55 }
  0x1c   : > { %v889_v4 = vld [vmem:[%s1039_s29 + $0x80] sm:$0xff]   ;;  %808 = vmatpush3.bf16.msra.mxu0 %v888_v3  ;;  %v893_v8 = vld [vmem:[%s1039_s29 + $0x88] sm:$0xff]   ;;  %v897_v12 = vld [vmem:[%s1039_s29 + $0x90] sm:$0xff]   ;;  %923 = vset.pattern.permute.xlu1 (!%p801_p7), %v979_v55  ;;  %v659_v1 = vand.u32 (!%p801_p7), 127, %v658_v62 }
  0x1d   : > { %830 = vmatpush3.bf16.msra.mxu1 %v889_v4  ;;  %809 = vmatprep.subr.bf16.mxu0 %v890_v5  ;;  %v898_v13 = vld [vmem:[%s1039_s29 + $0x58] sm:$0xff]   ;;  %v902_v17 = vld [vmem:[%s1039_s29 + $0x60] sm:$0xff]   ;;  %v906_v21 = vld [vmem:[%s1039_s29 + $0x68] sm:$0xff]  }
  0x1e   : > { %831 = vmatprep.subr.bf16.mxu1 %v891_v6  ;;  %v899_v14 = vld [vmem:[%s1039_s29 + $0xd8] sm:$0xff]   ;;  %v903_v18 = vld [vmem:[%s1039_s29 + $0xe0] sm:$0xff]   ;;  %v907_v22 = vld [vmem:[%s1039_s29 + $0xe8] sm:$0xff]   ;;  %vm660_vm6 = vcmp.lt.s32.totalorder (!%p801_p7), %v659_v1, 10 }
  0x1f   : > { %v900_v15 = vld [vmem:[%s1039_s29 + $0x18] sm:$0xff]   ;;  %v904_v19 = vld [vmem:[%s1039_s29 + $0x20] sm:$0xff]   ;;  %v908_v23 = vld [vmem:[%s1039_s29 + $0x28] sm:$0xff]  }
  0x20   : > { %810 = vmatpush3.bf16.msra.mxu0 %v892_v7  ;;  %v901_v16 = vld [vmem:[%s1039_s29 + $0x98] sm:$0xff]   ;;  %v905_v20 = vld [vmem:[%s1039_s29 + $0xa0] sm:$0xff]   ;;  %v909_v24 = vld [vmem:[%s1039_s29 + $0xa8] sm:$0xff]  }
  0x21   : > { %832 = vmatpush3.bf16.msra.mxu1 %v893_v8  ;;  %811 = vmatprep.subr.bf16.mxu0 %v894_v9  ;;  %v910_v25 = vld [vmem:[%s1039_s29 + $0x70] sm:$0xff]   ;;  %v914_v29 = vld [vmem:[%s1039_s29 + $0x78] sm:$0xff]   ;;  %v263_v33 = vld [vmem:[%s1034_s25] sm:$0xff] }
  0x22   : > { %833 = vmatprep.subr.bf16.mxu1 %v895_v10  ;;  %v911_v26 = vld [vmem:[%s1039_s29 + $0xf0] sm:$0xff]   ;;  %v915_v30 = vld [vmem:[%s1039_s29 + $0xf8] sm:$0xff]   ;;  %v264_v34 = vld [vmem:[%s1034_s25 + $0x8] sm:$0xff]  ;;  %v765_v35 = vcombine.low %v263_v33, %v263_v33  ;;  %v766_v36 = vcombine.high %v263_v33, %v263_v33 }
  0x23   : > { %v912_v27 = vld [vmem:[%s1039_s29 + $0x30] sm:$0xff]   ;;  %v916_v31 = vld [vmem:[%s1039_s29 + $0x38] sm:$0xff]   ;;  %v767_v37 = vcombine.low %v264_v34, %v264_v34  ;;  %v768_v38 = vcombine.high %v264_v34, %v264_v34  ;;  %v262_v47 = vld [vmem:[#allocation2] sm:$0xff] }
  0x24   : > { %812 = vmatpush3.bf16.msra.mxu0 %v896_v11  ;;  %v913_v28 = vld [vmem:[%s1039_s29 + $0xb0] sm:$0xff]   ;;  %v917_v32 = vld [vmem:[%s1039_s29 + $0xb8] sm:$0xff]   ;;  %567 = vmatprep.mubr.bf16.mxu0 %v766_v36  ;;  %v630_v52 = vld [vmem:[%s1120_s0] sm:$0xff] (!%p801_p7) }
  0x25   : > { %834 = vmatpush3.bf16.msra.mxu1 %v897_v12  ;;  %813 = vmatprep.subr.bf16.mxu0 %v898_v13  ;;  %v802_v54 = vld [vmem:[%s1123_s3] ss:$0 sm:$0xff] (!%p801_p7)  ;;  %vm631_vm0 = vcmp.eq.s32.totalorder (!%p801_p7), %v630_v52, 0  ;;  %vm650_vm1 = vcmp.eq.s32.totalorder (!%p801_p7), %v630_v52, 2  ;;  %vm640_vm2 = vcmp.eq.s32.totalorder (!%p801_p7), %v630_v52, 1 }
  0x26   : > { %835 = vmatprep.subr.bf16.mxu1 %v899_v14  ;;  %607 = vmatprep.mubr.bf16.mxu1 %v768_v38  ;;  %v632_v56 = vsel (!%p801_p7), %vm631_vm0, 1, %v979_v55  ;;  %v651_v57 = vsel (!%p801_p7), %vm650_vm1, 1, %v979_v55  ;;  %v641_v59 = vsel (!%p801_p7), %vm640_vm2, 1, %v979_v55 }
  0x27   : > { %634 = vperm.xlu0 (!%p801_p7), %922, %v632_v56   ;;  %653 = vperm.xlu1 (!%p801_p7), %923, %v651_v57  }
  0x28   : > { %814 = vmatpush3.bf16.msra.mxu0 %v900_v15 }
  0x29   : > { %836 = vmatpush3.bf16.msra.mxu1 %v901_v16  ;;  %815 = vmatprep.subr.bf16.mxu0 %v902_v17 }
  0x2a   : > { %837 = vmatprep.subr.bf16.mxu1 %v903_v18 }
  0x2b   : > { %643 = vperm.xlu0 (!%p801_p7), %922, %v641_v59  }
  0x2c   : > { %816 = vmatpush3.bf16.msra.mxu0 %v904_v19 }
  0x2d   : > { %838 = vmatpush3.bf16.msra.mxu1 %v905_v20  ;;  %817 = vmatprep.subr.bf16.mxu0 %v906_v21 }
  0x2e   : > { %839 = vmatprep.subr.bf16.mxu1 %v907_v22 }
  0x30   : > { %818 = vmatpush3.bf16.msra.mxu0 %v908_v23 }
  0x31   : > { %840 = vmatpush3.bf16.msra.mxu1 %v909_v24  ;;  %819 = vmatprep.subr.bf16.mxu0 %v910_v25 }
  0x32   : > { %841 = vmatprep.subr.bf16.mxu1 %v911_v26 }
  0x34   : > { %820 = vmatpush3.bf16.msra.mxu0 %v912_v27 }
  0x35   : > { %842 = vmatpush3.bf16.msra.mxu1 %v913_v28  ;;  %821 = vmatprep.subr.bf16.mxu0 %v914_v29 }
  0x36   : > { %843 = vmatprep.subr.bf16.mxu1 %v915_v30 }
  0x38   : > { %822 = vmatpush3.bf16.msra.mxu0 %v916_v31 }
  0x39   : > { %844 = vmatpush3.bf16.msra.mxu1 %v917_v32 }
  0x3b   : > { %568 = vmatmul.mubr.bf16.vlgmr.msra.gmra.mrb[0].mxu0 %v765_v35 }
  0x3c   : > { %608 = vmatmul.mubr.bf16.vlgmr.msra.gmra.mrb[0].mxu1 %v767_v37 }
  0xa6   : > { %v635_v60 = vpop.permute.xlu0 (!%p801_p7), %634  ;;  %v654_v61 = vpop.permute.xlu1 (!%p801_p7), %653 }
  0xa7   : > { %vm636_vm3 = vcmp.eq.s32.totalorder (!%p801_p7), %v635_v60, 1  ;;  %vm655_vm5 = vcmp.eq.s32.totalorder (!%p801_p7), %v654_v61, 1 }
  0xaa   : > { %v644_v63 = vpop.permute.xlu0 (!%p801_p7), %643 }
  0xab   : > { %vm645_vm4 = vcmp.eq.s32.totalorder (!%p801_p7), %v644_v63, 1 }
 0x10e   : > { %v823_v39 = vpop.f32.mrb[0].mxu0 }
 0x10f   : > { %v845_v40 = vpop.f32.mrb[0].mxu1  ;;  %v824_v41 = vpop.f32.mrb[1].mxu0 }
 0x110   : > { %v846_v42 = vpop.f32.mrb[1].mxu1  ;;  %v825_v43 = vadd.f32 %v824_v41, %v823_v39  ;;  %v826_v45 = vpop.f32.mrb[2].mxu0 }
 0x111   : > { %v847_v44 = vadd.f32 %v846_v42, %v845_v40  ;;  %v848_v46 = vpop.f32.mrb[2].mxu1  ;;  %v827_v48 = vpop.f32.mrb[3].mxu0  ;;  %620 = sbr.rel (%p801_p7) target bundleno = 411 (0x19b), region = 44 }
 0x112   : > { %v849_v49 = vpop.f32.mrb[3].mxu1 }
 0x113   : > { %v610_v50 = vadd.f32 %v847_v44, %v825_v43 }
 0x115   : > { %v615_v51 = vadd.f32 %v610_v50, %v262_v47 }
 0x117   : > { %616 = vst [vmem:[#allocation2] sm:$0xff] %v615_v51 }
 0x11e   : > { %v621_v53 = vld [vmem:[#allocation2] sm:$0xff] }
 0x11f   : > { %v629_v58 = vadd.f32 %v802_v54, %v621_v53 }
 0x121   : > { %638 = vrot.lane.b32.xlu1 %v629_v58, %s980_s8  ;;  %648 = vrot.lane.b32.xlu0 %v629_v58, %s981_s9  ;;  %v637_v2 = vsel %vm636_vm3, %v629_v58, 0.0 }
 0x193   : > { %v639_v0 = vpop.permute.xlu1 %638  ;;  %v649_v5 = vpop.permute.xlu0 %648 }
 0x194   : > { %v646_v3 = vsel %vm645_vm4, %v639_v0, 0.0  ;;  %v656_v6 = vsel %vm655_vm5, %v649_v5, 0.0 }
 0x195   : > { %v647_v4 = vadd.f32 %v646_v3, %v637_v2 }
 0x197   : > { %v657_v7 = vadd.f32 %v656_v6, %v647_v4 }
 0x199   : > { %v661_v8 = vsel %vm660_vm6, %v657_v7, 0.0 }
 0x19a   : > { %662 = vst [vmem:[#allocation3] sm:$0xff] %v661_v8 }
 0x19b PF: > { %p1085_p8 = scmp.eq.s32.totalorder %s755_s18, 1  ;;  %s982_s11 = smov [#allocation3]  }
 0x19c   : > { %s672_s12 = sshll.u32 %s982_s11, 4  ;;  %s673_s12 = int_to_ptr.vmem [resolvable:$true] %s672_s12 }
 0x19d   : > { %s924_s13 = scalar_lea.vmem %s673_s12, 128  ;;  %p931_p12 = scmp.lt.s32.totalorder %s673_s12, %s673_s12 }
 0x19e   : > { %p925_p9 = scmp.ne.s32.totalorder %s673_s12, %s924_s13  ;;  %p932_p13 = scmp.lt.s32.totalorder %s924_s13, %s924_s13 }
 0x1a0   : > { %p926_p10 = pnand %p925_p9, %p1085_p8  ;;  %p933_p0 = por %p932_p13, %p931_p12 }
 0x1a2   : > { %p927_p11 = pneg %p926_p10 }
 0x1a4   : > { %p934_p1 = pnand %p933_p0, %p927_p11 }
 0x1a6   : > { %937 = shalt.err (!%p934_p1)
}
 0x1a7   : > { %s938_s18 = scalar_lea.hbm %s1124_s4, 128 }
 0x1a8   : > { %p939_p2 = scmp.ne.s32.totalorder %s1124_s4, %s938_s18  ;;  %p944_p5 = scmp.lt.u32.totalorder %s938_s18, %s1124_s4 }
 0x1aa   : > { %p940_p3 = pnand %p939_p2, %p1085_p8 }
 0x1ac   : > { %p941_p4 = pneg %p940_p3 }
 0x1ae   : > { %p946_p6 = pnand %p944_p5, %p941_p4 }
 0x1b0   : > { %949 = shalt.err (!%p946_p6)
}
 0x1b1   : > { %852 = dma.vmem_to_hbm [thread:$0]  (%p1085_p8), %s673_s12, 128, %s1124_s4, [#allocation4]  }
 0x1b2   : > { %963 = dma.done.wait (%p1085_p8), [#allocation4], 128  }
 0x1b3   : > { %965 = vsyncadd (%p1085_p8), [#allocation4], 4294967168 }
 0x1b4 PF: > { %s15_s17 = sadd.s32 1, %s976_s17   ;;  %s1126_s15 = smov %s972_s16 }
 0x1b5   : > { %p12_p7 = scmp.ge.s32.totalorder %s15_s17, 4   ;;  %s1127_s16 = smov %s1129_s19 }
 0x1b7   :  { %14 = sbr.rel (!%p12_p7) target bundleno = 2 (0x2), region = 78 }
 0x1be   :  { %685 = vsyncpa [#allocation4], 1 }
 0x1bf   :  { %687 = vsyncpa [#allocation4 + $0x1], 1 }

</bundles_post_ra>
